<compile_context>
chip_gen: v7x
topology: tpu7x:2x2x1
jax: 0.10.0
libtpu: 0.0.40
codegen_flags: <defaults>
</compile_context>

<pallas_src>
import jax
import jax.numpy as jnp
import numpy as np
from jax.experimental import pallas as pl
from jax.experimental.pallas import tpu as pltpu


def _angle_mod_kernel(x_ref, w1_ref, b1_ref, w2_ref, b2_ref, w3_ref, b3_ref,
                      out_ref):
    # x_ref / out_ref : (D, TN)  -- features on sublanes, batch on lanes.
    # w1_ref, b1_ref, b2_ref, w3_ref : (H, 1);  w2_ref : (H, H)
    # b3_ref : (1, 1) scalar in SMEM.
    x = x_ref[...]                              # (D, TN) f32
    x1 = x[0:1, :]                              # (1, TN)
    x2 = x[1:2, :]                              # (1, TN)

    r = jnp.sqrt(x1 * x1 + x2 * x2)             # (1, TN)   EUP sqrt

    # Layer 1: Linear(1,H) degenerate matmul -> VPU broadcast outer product.
    t1 = jnp.tanh(w1_ref[...] * r + b1_ref[...])                      # (H, TN)

    # Layer 2: Linear(H,H) -> the only real matmul; keep it on the MXU.
    t2 = jnp.tanh(jnp.dot(w2_ref[...], t1,
                          preferred_element_type=jnp.float32)
                  + b2_ref[...])                                       # (H, TN)

    # Layer 3: Linear(H,1) -> broadcast-multiply + sublane reduce (VPU/XLU).
    f_r = (jnp.sum(w3_ref[...] * t2, axis=0, keepdims=True)
           + b3_ref[0, 0])                                             # (1, TN)

    c = jnp.cos(f_r)                            # (1, TN)  EUP
    s = jnp.sin(f_r)                            # (1, TN)  EUP

    y0 = c * x1 + s * x2                        # (1, TN)
    y1 = c * x2 - s * x1                        # (1, TN)

    # Direct row-slice stores (no iota / nested where).
    out_ref[0:1, :] = y0
    out_ref[1:2, :] = y1
    if x_ref.shape[0] > 2:                      # trace-time branch on static D
        out_ref[2:, :] = x[2:, :]


def _round_up(a, b):
    return -(-a // b) * b


def angle_modulation_two(x, params, *, max_block_n=16 * 1024,
                         target_grid_steps=4):
    """x: (N, D) float32, D >= 2. params: FCNN weights stored as (in, out)."""
    N, D = x.shape
    assert D >= 2
    H = params["w1"].shape[1]
    f32 = jnp.float32

    # ---- host-side weight prep (HxH scale, one-time): fold the sigmoid affine
    # constants so the kernel runs pure tanh layers. ----
    w1s = (0.5 * params["w1"]).astype(f32).T                                  # (H, 1)
    b1s = (0.5 * params["b1"]).astype(f32).T                                  # (H, 1)
    w2s = (0.25 * params["w2"]).astype(f32).T                                 # (H, H)
    b2s = (0.5 * params["b2"]
           + 0.25 * jnp.sum(params["w2"], axis=0, keepdims=True)).astype(f32).T  # (H, 1)
    w3s = (0.5 * params["w3"]).astype(f32)                                    # (H, 1)
    b3s = (params["b3"] + 0.5 * jnp.sum(params["w3"])).astype(f32).reshape(1, 1)

    # ---- lane tile: big (amortize ~0.35 us/step) but keep >= target_grid_steps
    # grid steps so both v7x TensorCores get work; always a multiple of 128. ----
    tn = _round_up(max(-(-N // target_grid_steps), 128), 128)
    tn = min(tn, max_block_n)
    grid = (pl.cdiv(N, tn),)        # partial last block masked by Pallas; no host pad

    # Feature-major layout: batch on the 128-lane axis (lane-dense EUP/stores).
    xt = x.astype(f32).T                        # (D, N)

    const = lambda i: (0, 0)                    # weights stay VMEM-resident

    out_t = pl.pallas_call(
        _angle_mod_kernel,
        out_shape=jax.ShapeDtypeStruct((D, N), f32),
        grid=grid,
        in_specs=[
            pl.BlockSpec((D, tn), lambda i: (0, i)),          # x^T tile
            pl.BlockSpec((H, 1), const),                      # 0.5*w1 (column)
            pl.BlockSpec((H, 1), const),                      # 0.5*b1
            pl.BlockSpec((H, H), const),                      # 0.25*W2^T
            pl.BlockSpec((H, 1), const),                      # folded b2
            pl.BlockSpec((H, 1), const),                      # 0.5*w3
            pl.BlockSpec(memory_space=pltpu.MemorySpace.SMEM),  # folded b3 scalar
        ],
        out_specs=pl.BlockSpec((D, tn), lambda i: (0, i)),
        compiler_params=pltpu.CompilerParams(
            dimension_semantics=("parallel",),   # megacore-shardable on v7x
            vmem_limit_bytes=32 * 1024 * 1024,   # safe on v7x's 64 MiB VMEM; ample for TN<=16K
        ),
        cost_estimate=pl.CostEstimate(
            flops=N * (2 * H * H + 4 * H + 10),
            transcendentals=N * (2 * H + 3),     # 2H tanh + sqrt + sin + cos
            bytes_accessed=2 * N * D * 4 + (H * H + 4 * H + 1) * 4,
        ),
    )(xt, w1s, b1s, w2s, b2s, w3s, b3s)

    return out_t.T                              # back to (N, D)


def init_params(hidden_dim, key):
    """Deterministic init mirroring nn.Linear shapes (stored as (in, out))."""
    k1, k2, k3, k4, k5, k6 = jax.random.split(key, 6)

    def lin(kw, kb, fan_in, fan_out):
        bound = 1.0 / np.sqrt(fan_in)
        w = jax.random.uniform(kw, (fan_in, fan_out), jnp.float32, -bound, bound)
        b = jax.random.uniform(kb, (1, fan_out), jnp.float32, -bound, bound)
        return w, b

    w1, b1 = lin(k1, k2, 1, hidden_dim)
    w2, b2 = lin(k3, k4, hidden_dim, hidden_dim)
    w3, b3 = lin(k5, k6, hidden_dim, 1)
    return dict(w1=w1, b1=b1, w2=w2, b2=b2, w3=w3, b3=b3)


def reference(x, p):
    """Plain-JAX reference of the PyTorch forward."""
    x1 = x[:, 0]
    x2 = x[:, 1]
    r = jnp.sqrt(x1 ** 2 + x2 ** 2).reshape(-1, 1)
    h1 = jax.nn.sigmoid(r @ p["w1"] + p["b1"])
    h2 = jax.nn.sigmoid(h1 @ p["w2"] + p["b2"])
    f_r = (h2 @ p["w3"] + p["b3"]).reshape(-1)
    y = x
    y = y.at[:, 0].set(jnp.cos(f_r) * x1 + jnp.sin(f_r) * x2)
    y = y.at[:, 1].set(-jnp.sin(f_r) * x1 + jnp.cos(f_r) * x2)
    return y


if __name__ == "__main__":
    N, D, H = 256, 4, 32          # batch=256, input_dim=4 (>=2), hidden_dim=32
    key = jax.random.PRNGKey(0)
    kx, kp = jax.random.split(key)

    x = jax.random.normal(kx, (N, D), jnp.float32)
    params = init_params(H, kp)

    y = angle_modulation_two(x, params)
    y = jax.block_until_ready(y)

    y_ref = reference(x, params)
    np.testing.assert_allclose(np.asarray(y), np.asarray(y_ref),
                               rtol=1e-5, atol=2e-5)
    print("KERNEL_OK")
</pallas_src>

<mosaic_0001>
module attributes {stable_mosaic.version = 11 : i64} {
  func.func @_angle_mod_kernel(%arg0: i32, %arg1: memref<4x128xf32, #tpu.memory_space<vmem>>, %arg2: memref<32x1xf32, #tpu.memory_space<vmem>>, %arg3: memref<32x1xf32, #tpu.memory_space<vmem>>, %arg4: memref<32x32xf32, #tpu.memory_space<vmem>>, %arg5: memref<32x1xf32, #tpu.memory_space<vmem>>, %arg6: memref<32x1xf32, #tpu.memory_space<vmem>>, %arg7: memref<1x1xf32, #tpu.memory_space<smem>>, %arg8: memref<4x128xf32, #tpu.memory_space<vmem>>) attributes {dimension_semantics = [#tpu.dimension_semantics<parallel>], iteration_bounds = array<i64: 2>, scalar_prefetch = 0 : i64, scratch_operands = 0 : i64, tpu.core_type = #tpu.core_type<tc>, window_params = [{transform_indices = @transform_0, window_bounds = array<i64: 4, 128>}, {pipeline_mode = #tpu.pipeline_mode<synchronous>, transform_indices = @transform_1, window_bounds = array<i64: 32, 1>}, {pipeline_mode = #tpu.pipeline_mode<synchronous>, transform_indices = @transform_2, window_bounds = array<i64: 32, 1>}, {pipeline_mode = #tpu.pipeline_mode<synchronous>, transform_indices = @transform_3, window_bounds = array<i64: 32, 32>}, {pipeline_mode = #tpu.pipeline_mode<synchronous>, transform_indices = @transform_4, window_bounds = array<i64: 32, 1>}, {pipeline_mode = #tpu.pipeline_mode<synchronous>, transform_indices = @transform_5, window_bounds = array<i64: 32, 1>}, {transform_indices = @transform_6, window_bounds = array<i64: 1, 1>}, {transform_indices = @transform_7, window_bounds = array<i64: 4, 128>}]} {
    %c0 = arith.constant 0 : index
    %c0_0 = arith.constant 0 : index
    %0 = vector.load %arg1[%c0, %c0_0] : memref<4x128xf32, #tpu.memory_space<vmem>>, vector<4x128xf32>
    %1 = vector.extract_strided_slice %0 {offsets = [0, 0], sizes = [1, 128], strides = [1, 1]} : vector<4x128xf32> to vector<1x128xf32>
    %2 = vector.extract_strided_slice %0 {offsets = [1, 0], sizes = [1, 128], strides = [1, 1]} : vector<4x128xf32> to vector<1x128xf32>
    %3 = arith.mulf %1, %1 : vector<1x128xf32>
    %4 = arith.mulf %2, %2 : vector<1x128xf32>
    %5 = arith.addf %3, %4 : vector<1x128xf32>
    %6 = math.sqrt %5 : vector<1x128xf32>
    %c0_1 = arith.constant 0 : index
    %c0_2 = arith.constant 0 : index
    %7 = vector.load %arg2[%c0_1, %c0_2] : memref<32x1xf32, #tpu.memory_space<vmem>>, vector<32x1xf32>
    %8 = vector.broadcast %7 : vector<32x1xf32> to vector<32x128xf32>
    %9 = vector.broadcast %6 : vector<1x128xf32> to vector<32x128xf32>
    %10 = arith.mulf %8, %9 : vector<32x128xf32>
    %c0_3 = arith.constant 0 : index
    %c0_4 = arith.constant 0 : index
    %11 = vector.load %arg3[%c0_3, %c0_4] : memref<32x1xf32, #tpu.memory_space<vmem>>, vector<32x1xf32>
    %12 = vector.broadcast %11 : vector<32x1xf32> to vector<32x128xf32>
    %13 = arith.addf %10, %12 : vector<32x128xf32>
    %14 = math.tanh %13 : vector<32x128xf32>
    %c0_5 = arith.constant 0 : index
    %c0_6 = arith.constant 0 : index
    %15 = vector.load %arg4[%c0_5, %c0_6] : memref<32x32xf32, #tpu.memory_space<vmem>>, vector<32x32xf32>
    %cst = arith.constant dense<0.000000e+00> : vector<32x128xf32>
    %16 = tpu.matmul %15, %14, %cst {dimension_numbers = #tpu.dot_dimension_numbers<[1], [0], [0], [1], [0, 0, 1, 1], [], []>} : vector<32x32xf32>, vector<32x128xf32>, vector<32x128xf32> -> vector<32x128xf32>
    %c0_7 = arith.constant 0 : index
    %c0_8 = arith.constant 0 : index
    %17 = vector.load %arg5[%c0_7, %c0_8] : memref<32x1xf32, #tpu.memory_space<vmem>>, vector<32x1xf32>
    %18 = vector.broadcast %17 : vector<32x1xf32> to vector<32x128xf32>
    %19 = arith.addf %16, %18 : vector<32x128xf32>
    %20 = math.tanh %19 : vector<32x128xf32>
    %c0_9 = arith.constant 0 : index
    %c0_10 = arith.constant 0 : index
    %21 = vector.load %arg6[%c0_9, %c0_10] : memref<32x1xf32, #tpu.memory_space<vmem>>, vector<32x1xf32>
    %22 = vector.broadcast %21 : vector<32x1xf32> to vector<32x128xf32>
    %23 = arith.mulf %22, %20 : vector<32x128xf32>
    %cst_11 = arith.constant dense<0.000000e+00> : vector<128xf32>
    %24 = vector.multi_reduction <add>, %23, %cst_11 [0] : vector<32x128xf32> to vector<128xf32>
    %25 = vector.shape_cast %24 : vector<128xf32> to vector<1x128xf32>
    %c0_12 = arith.constant 0 : index
    %c0_13 = arith.constant 0 : index
    %26 = memref.load %arg7[%c0_12, %c0_13] : memref<1x1xf32, #tpu.memory_space<smem>>
    %27 = vector.broadcast %26 : f32 to vector<1x128xf32>
    %28 = arith.addf %25, %27 : vector<1x128xf32>
    %29 = math.cos %28 : vector<1x128xf32>
    %30 = math.sin %28 : vector<1x128xf32>
    %31 = arith.mulf %29, %1 : vector<1x128xf32>
    %32 = arith.mulf %30, %2 : vector<1x128xf32>
    %33 = arith.addf %31, %32 : vector<1x128xf32>
    %34 = arith.mulf %29, %2 : vector<1x128xf32>
    %35 = arith.mulf %30, %1 : vector<1x128xf32>
    %36 = arith.subf %34, %35 : vector<1x128xf32>
    %c0_14 = arith.constant 0 : index
    %c0_15 = arith.constant 0 : index
    %37 = vector.load %arg8[%c0_14, %c0_15] : memref<4x128xf32, #tpu.memory_space<vmem>>, vector<1x128xf32>
    tpu.vector_store %arg8[%c0_14, %c0_15], %33 {strides = array<i32>} : memref<4x128xf32, #tpu.memory_space<vmem>>, vector<1x128xf32>,
    %c1 = arith.constant 1 : index
    %c0_16 = arith.constant 0 : index
    %38 = vector.load %arg8[%c1, %c0_16] : memref<4x128xf32, #tpu.memory_space<vmem>>, vector<1x128xf32>
    tpu.vector_store %arg8[%c1, %c0_16], %36 {strides = array<i32>} : memref<4x128xf32, #tpu.memory_space<vmem>>, vector<1x128xf32>,
    %39 = vector.extract_strided_slice %0 {offsets = [2, 0], sizes = [2, 128], strides = [1, 1]} : vector<4x128xf32> to vector<2x128xf32>
    %c2 = arith.constant 2 : index
    %c0_17 = arith.constant 0 : index
    %40 = vector.load %arg8[%c2, %c0_17] : memref<4x128xf32, #tpu.memory_space<vmem>>, vector<2x128xf32>
    tpu.vector_store %arg8[%c2, %c0_17], %39 {strides = array<i32>} : memref<4x128xf32, #tpu.memory_space<vmem>>, vector<2x128xf32>,
    return
  }
  func.func @transform_0(%arg0: i32) -> (i32, i32) {
    %c0_i32 = arith.constant 0 : i32
    %c0_i32_0 = arith.constant 0 : i32
    return %c0_i32, %arg0 : i32, i32
  }
  func.func @transform_1(%arg0: i32) -> (i32, i32) {
    %c0_i32 = arith.constant 0 : i32
    %c0_i32_0 = arith.constant 0 : i32
    %c0_i32_1 = arith.constant 0 : i32
    return %c0_i32, %c0_i32_0 : i32, i32
  }
  func.func @transform_2(%arg0: i32) -> (i32, i32) {
    %c0_i32 = arith.constant 0 : i32
    %c0_i32_0 = arith.constant 0 : i32
    %c0_i32_1 = arith.constant 0 : i32
    return %c0_i32, %c0_i32_0 : i32, i32
  }
  func.func @transform_3(%arg0: i32) -> (i32, i32) {
    %c0_i32 = arith.constant 0 : i32
    %c0_i32_0 = arith.constant 0 : i32
    %c0_i32_1 = arith.constant 0 : i32
    return %c0_i32, %c0_i32_0 : i32, i32
  }
  func.func @transform_4(%arg0: i32) -> (i32, i32) {
    %c0_i32 = arith.constant 0 : i32
    %c0_i32_0 = arith.constant 0 : i32
    %c0_i32_1 = arith.constant 0 : i32
    return %c0_i32, %c0_i32_0 : i32, i32
  }
  func.func @transform_5(%arg0: i32) -> (i32, i32) {
    %c0_i32 = arith.constant 0 : i32
    %c0_i32_0 = arith.constant 0 : i32
    %c0_i32_1 = arith.constant 0 : i32
    return %c0_i32, %c0_i32_0 : i32, i32
  }
  func.func @transform_6(%arg0: i32) -> (i32, i32) {
    %c0_i32 = arith.constant 0 : i32
    %c0_i32_0 = arith.constant 0 : i32
    %c0_i32_1 = arith.constant 0 : i32
    return %c0_i32, %c0_i32_0 : i32, i32
  }
  func.func @transform_7(%arg0: i32) -> (i32, i32) {
    %c0_i32 = arith.constant 0 : i32
    %c0_i32_0 = arith.constant 0 : i32
    return %c0_i32, %arg0 : i32, i32
  }
}

</mosaic_0001>

<bundles_post_ra>
// kernel: tpu_custom_call.1
= control target key start
LH: loop header
LB: loop body
LE: loop exit
PB: predicated region body
PF: predicated region fallthrough
CT: control target
= control target key end

     0   :  { %s1261_s0 = inlined_call_operand.vmem [shape: f32[4,256], index: 0, kind: input, shape index: {}]   ;;  %s1262_s1 = inlined_call_operand.vmem [shape: f32[32,1], index: 1, kind: input, shape index: {}]   ;;  %s1263_s2 = inlined_call_operand.vmem [shape: f32[32,1], index: 2, kind: input, shape index: {}]   ;;  %s1264_s3 = inlined_call_operand.vmem [shape: f32[32,32], index: 3, kind: input, shape index: {}]   ;;  %s1265_s4 = inlined_call_operand.vmem [shape: f32[32,1], index: 4, kind: input, shape index: {}]   ;;  %s1266_s5 = inlined_call_operand.vmem [shape: f32[32,1], index: 5, kind: input, shape index: {}]   ;;  %s1267_s6 = inlined_call_operand.<no memory space> [shape: f32[1,1], index: 6, kind: input, shape index: {}]   ;;  %s1268_s7 = inlined_call_operand.hbm [shape: f32[4,256], index: 7, kind: output, shape index: {}]  }
   0x1   :  { %12 = sst [smem:[#allocation2]] %s1267_s6 }
   0x2   :  { %13 = vsyncpa [#allocation4], 0 }
   0x3   :  { %15 = vsyncpa [#allocation4 + $0x1], 0  ;;  %s1059_s26 = smov 0   ;;  %s1061_s27 = smov 0  }
   0x4   :  { %s1063_s28 = smov 0   ;;  %s1065_s29 = smov 0  }
   0x5 LB: > { %s1080_s6 = sadd.s32 4294967295, %s1006_s29   ;;  %s814_s30 = sadd.s32 4294967294, %s1006_s29   ;;  %s1006_s29 = sphi %s1065_s29, %s1274_s29   ;;  %s1002_s28 = sphi %s1063_s28, %s1273_s28   ;;  %s998_s27 = sphi %s1061_s27, %s1272_s27   ;;  %s994_s26 = sphi %s1059_s26, %s1271_s26  }
   0x6   : > { %s1084_s8 = sadd.s32 1, %s1006_s29   ;;  %s180_s9 = sadd.s32 1, %s1002_s28 }
   0x7   : > { %s177_s10 = ssub.s32 %s1006_s29, %s1084_s8  ;;  %p190_p0 = scmp.ne.s32.totalorder %s1002_s28, %s998_s27 }
   0x8   : > { %p178_p1 = scmp.eq.s32.totalorder %s177_s10, 0  ;;  %p191_p2 = scmp.eq.s32.totalorder %s1080_s6, 1 }
   0x9   : > { %p196_p3 = scmp.ne.s32.totalorder %s998_s27, %s994_s26  ;;  %p197_p4 = scmp.eq.s32.totalorder %s814_s30, 1 }
   0xa   : > { %s1095_s11 = scalar_select %p178_p1, %s1002_s28, %s180_s9  }
   0xb   : > { %p1097_p5 = por %p191_p2, %p190_p0  ;;  %p1101_p6 = por %p197_p4, %p196_p3 }
   0xc   : > { %p817_p7 = scmp.ge.s32.totalorder %s1006_s29, 1  ;;  %p240_p8 = scmp.lt.s32.totalorder %s1006_s29, 3 }
   0xe   : > { %p241_p9 = pnand %p817_p7, %p240_p8 }
   0xf   : > { %v320_v0 = vld [vmem:[%s1263_s2] sm:$0xff] (!%p241_p9)  ;;  %v1008_v2 = vmov (!%p241_p9), 0   ;;  %v321_v3 = vld [vmem:[%s1263_s2 + $0x8] sm:$0xff] (!%p241_p9)  ;;  %v291_v5 = vld [vmem:[%s1262_s1 + $0x18] sm:$0xff] (!%p241_p9)  ;;  %vm380_vm0 = vcmask (!%p241_p9), 261120   ;;  %p271_p10 = scmp.lt.s32.totalorder (!%p241_p9), %s1080_s6, 1  ;;  %v312_v24 = vlaneseq (!%p241_p9) }
  0x10   : > { %244 = sbr.rel (%p241_p9) target bundleno = 524 (0x20c), region = 48  ;;  %v288_v1 = vld [vmem:[%s1262_s1] sm:$0xff] (!%p241_p9)  ;;  %921 = vset.pattern.permute.xlu1 (!%p241_p9), %v1008_v2  ;;  %920 = vset.pattern.permute.xlu0 (!%p241_p9), %v1008_v2  ;;  %v289_v4 = vld [vmem:[%s1262_s1 + $0x8] sm:$0xff] (!%p241_p9)  ;;  %v290_v6 = vld [vmem:[%s1262_s1 + $0x10] sm:$0xff] (!%p241_p9)  ;;  %s268_s14 = sand.u32 (!%p241_p9), 1, %s998_s27  }
  0x11   : > { %326 = vperm.xlu1 (!%p241_p9), %921, %v320_v0   ;;  %294 = vperm.xlu0 (!%p241_p9), %920, %v288_v1   ;;  %v323_v7 = vld [vmem:[%s1263_s2 + $0x18] sm:$0xff] (!%p241_p9)  ;;  %v322_v8 = vld [vmem:[%s1263_s2 + $0x10] sm:$0xff] (!%p241_p9)  ;;  %v357_v9 = vld [vmem:[%s1265_s4 + $0x8] sm:$0xff] (!%p241_p9)  ;;  %v313_v26 = vshrl.u32 (!%p241_p9), %v312_v24, 7  ;;  %s818_s15 = sshll.u32 (!%p241_p9), %s268_s14, 2  ;;  %s519_s17 = sld [smem:[#allocation2]] (!%p241_p9) }
  0x12   : > { %v356_v10 = vld [vmem:[%s1265_s4] sm:$0xff] (!%p241_p9)  ;;  %v359_v11 = vld [vmem:[%s1265_s4 + $0x18] sm:$0xff] (!%p241_p9)  ;;  %v358_v12 = vld [vmem:[%s1265_s4 + $0x10] sm:$0xff] (!%p241_p9)  ;;  %s1183_s16 = scalar_lea.vmem (!%p241_p9), [#allocation3], %s818_s15  ;;  %s833_s18 = sshll.u32 (!%p241_p9), %s1080_s6, 6 }
  0x13   : > { %v483_v13 = vld [vmem:[%s1266_s5 + $0x8] sm:$0xff] (!%p241_p9)  ;;  %v482_v14 = vld [vmem:[%s1266_s5] sm:$0xff] (!%p241_p9)  ;;  %v485_v15 = vld [vmem:[%s1266_s5 + $0x18] sm:$0xff] (!%p241_p9)  ;;  %v314_v29 = vsub.s32 (!%p241_p9), 0, %v313_v26  ;;  %s755_s19 = sshll.u32 (!%p241_p9), %s1183_s16, 4  ;;  %s1215_s22 = scalar_lea.hbm (!%p241_p9), %s1268_s7, %s833_s18  ;;  %s1217_s19 = int_to_ptr.vmem [resolvable:$true] %s755_s19 }
  0x14   : > { %v484_v16 = vld [vmem:[%s1266_s5 + $0x10] sm:$0xff] (!%p241_p9)  ;;  %v352_v17 = vld [vmem:[%s1264_s3] sm:$0xff] (!%p241_p9)  ;;  %v353_v54 = vld [vmem:[%s1264_s3 + $0x8] sm:$0xff] (!%p241_p9)  ;;  %s944_s23 = scalar_lea.vmem (!%p241_p9), %s1217_s19, 64 }
  0x15   : > { %331 = vperm.xlu1 (!%p241_p9), %921, %v321_v3   ;;  %299 = vperm.xlu0 (!%p241_p9), %920, %v289_v4   ;;  %v354_v18 = vld [vmem:[%s1264_s3 + $0x10] sm:$0xff] (!%p241_p9)  ;;  %v355_v55 = vld [vmem:[%s1264_s3 + $0x18] sm:$0xff] (!%p241_p9)  ;;  %p945_p11 = scmp.ne.s32.totalorder (!%p241_p9), %s1217_s19, %s944_s23 }
  0x16   : > { %852 = vmatprep.mubr.msk.f32.mxu0 (!%p241_p9), %vm380_vm0, %v352_v17  ;;  %855 = vmatprep.mubr.msk.f32.mxu1 (!%p241_p9), %vm380_vm0, %v354_v18 }
  0x17   : > { %s272_s20 = scalar_select %p271_p10, %s1080_s6, 1 }
  0x18   : > { %s742_s6 = scalar_lea.sflag [#allocation4], %s268_s14  ;;  %p946_p12 = pnand %p945_p11, %p1097_p5 }
  0x19   : > { %309 = vperm.xlu1 %921, %v291_v5   ;;  %304 = vperm.xlu0 %920, %v290_v6   ;;  %s819_s21 = sshll.u32 %s272_s20, 2 }
  0x1a   : > { %s274_s24 = scalar_lea.vmem %s1261_s0, %s819_s21  ;;  %p947_p13 = pneg %p946_p12 }
  0x1b   : > { %v1168_v19 = vld [vmem:[%s274_s24] sm:$0xf]  ;;  %s1015_s24 = smov [#allocation3]  }
  0x1c   : > { %v276_v20 = vmul.f32 %v1168_v19, %v1168_v19  ;;  %740 = vst [vmem:[%s1183_s16] sm:$0xc] %v1168_v19  ;;  %s948_s25 = sshll.u32 %s1015_s24, 4  ;;  %s949_s25 = int_to_ptr.vmem [resolvable:$false] %s948_s25 }
  0x1d   : > { %341 = vperm.xlu1 %921, %v323_v7   ;;  %336 = vperm.xlu0 %920, %v322_v8   ;;  %s950_s30 = scalar_lea.vmem %s949_s25, 128  ;;  %p951_p0 = scmp.lt.s32.totalorder %s1217_s19, %s949_s25 }
  0x1e   : > { %v278_v21 = vrot.slane %v276_v20, 1  ;;  %p952_p1 = scmp.lt.s32.totalorder %s950_s30, %s944_s23 }
  0x20   : > { %v280_v22 = vadd.f32 %v278_v21, %v276_v20  ;;  %p953_p2 = por %p952_p1, %p951_p0 }
  0x21   : > { %367 = vperm.xlu1 %921, %v357_v9   ;;  %362 = vperm.xlu0 %920, %v356_v10  }
  0x22   : > { %922 = vrsqrt.f32 %v280_v22  ;;  %vm283_vm1 = vcmp.eq.f32.partialorder %v280_v22, inf  ;;  %v286_v27 = vand.u32 2147483648, %v280_v22  ;;  %vm285_vm2 = vcmp.eq.f32.partialorder %v280_v22, 0.0  ;;  %p954_p3 = pnand %p953_p2, %p947_p13 }
  0x25   : > { %377 = vperm.xlu1 %921, %v359_v11   ;;  %372 = vperm.xlu0 %920, %v358_v12  }
  0x29   : > { %493 = vperm.xlu1 %921, %v483_v13   ;;  %488 = vperm.xlu0 %920, %v482_v14  }
  0x2c   : > { %v923_v23 = vpop.eup %922 }
  0x2d   : > { %503 = vperm.xlu1 %921, %v485_v15   ;;  %498 = vperm.xlu0 %920, %v484_v16   ;;  %v282_v25 = vmul.f32 %v923_v23, %v280_v22 }
  0x2f   : > { %v284_v28 = vsel %vm283_vm1, %v280_v22, %v282_v25  ;;  %v520_v25 = vstv %s519_s17 }
  0x30   : > { %v287_v30 = vsel %vm285_vm2, %v286_v27, %v284_v28 }
  0x31   : > { %v315_v31 = vrot.slane %v287_v30, %v314_v29 }
  0x90   : > { %v327_v32 = vpop.permute.xlu1 %326  ;;  %v295_v33 = vpop.permute.xlu0 %294 }
  0x91   : > { %v316_v34 = vmul.f32 %v315_v31, %v295_v33 }
  0x93   : > { %v344_v35 = vadd.f32 %v327_v32, %v316_v34 }
  0x94   : > { %v332_v36 = vpop.permute.xlu1 %331  ;;  %v300_v37 = vpop.permute.xlu0 %299 }
  0x95   : > { %v317_v38 = vmul.f32 %v315_v31, %v300_v37  ;;  %924 = vtanh.f32 %v344_v35 }
  0x97   : > { %v345_v39 = vadd.f32 %v332_v36, %v317_v38  ;;  %v1009_v38 = vmov 683565275  }
  0x98   : > { %v310_v40 = vpop.permute.xlu1 %309  ;;  %v305_v41 = vpop.permute.xlu0 %304 }
  0x99   : > { %926 = vtanh.f32 %v345_v39  ;;  %v319_v42 = vmul.f32 %v315_v31, %v310_v40  ;;  %v318_v43 = vmul.f32 %v315_v31, %v305_v41  ;;  %v1010_v40 = vmov 2475754826  }
  0x9c   : > { %v342_v44 = vpop.permute.xlu1 %341  ;;  %v337_v45 = vpop.permute.xlu0 %336 }
  0x9d   : > { %v347_v46 = vadd.f32 %v342_v44, %v319_v42  ;;  %v346_v47 = vadd.f32 %v337_v45, %v318_v43  ;;  %v1011_v43 = vmov 2131351028  }
  0x9f   : > { %928 = vtanh.f32 %v347_v46  ;;  %v925_v48 = vpop.eup %924  ;;  %v1012_v46 = vmov 2102212464  }
  0xa0   : > { %930 = vtanh.f32 %v346_v47  ;;  %v363_v56 = vpop.permute.xlu0 %362  ;;  %v368_v57 = vpop.permute.xlu1 %367 }
  0xa3   : > { %v927_v49 = vpop.eup %926 }
  0xa4   : > { %v858_v50 = vpack.c.bf16 %v927_v49, %v925_v48  ;;  %v373_v58 = vpop.permute.xlu0 %372  ;;  %v378_v0 = vpop.permute.xlu1 %377  ;;  %v1013_v49 = vmov 920167782  }
  0xa6   : > { %859 = vmatprep.subr.bf16.mxu0 %v858_v50  ;;  %866 = vmatprep.subr.bf16.mxu1 %v858_v50 }
  0xa7   : > { %861 = vmatpush3.bf16.msra.mxu0 %v858_v50  ;;  %868 = vmatpush3.bf16.msra.mxu1 %v858_v50 }
  0xa8   : > { %v489_v4 = vpop.permute.xlu0 %488  ;;  %v494_v6 = vpop.permute.xlu1 %493 }
  0xa9   : > { %v929_v51 = vpop.eup %928 }
  0xaa   : > { %v931_v52 = vpop.eup %930 }
  0xab   : > { %v862_v53 = vpack.c.bf16 %v929_v51, %v931_v52  ;;  %v1014_v52 = vmov 1326507024  }
  0xac   : > { %v499_v12 = vpop.permute.xlu0 %498  ;;  %v504_v15 = vpop.permute.xlu1 %503 }
  0xad   : > { %863 = vmatprep.subr.bf16.mxu0 %v862_v53  ;;  %867 = vmatprep.subr.bf16.mxu1 %v862_v53 }
  0xae   : > { %865 = vmatpush3.bf16.msra.mxu0 %v862_v53  ;;  %869 = vmatpush3.bf16.msra.mxu1 %v862_v53 }
  0xb1   : > { %853 = vmatmul.mubr.msk.f32.vlgmr.msra.gmra.mrb[0].mxu0 %vm380_vm0, %v353_v54  ;;  %856 = vmatmul.mubr.msk.f32.vlgmr.msra.gmra.mrb[0].mxu1 %vm380_vm0, %v355_v55 }
 0x184   : > { %v854_v59 = vpop.f32.mrb[0].mxu0  ;;  %v857_v60 = vpop.f32.mrb[0].mxu1 }
 0x185   : > { %v465_v61 = vadd.f32 %v854_v59, %v368_v57  ;;  %v459_v62 = vpop.f32.mrb[1].mxu0  ;;  %v469_v63 = vpop.f32.mrb[1].mxu1  ;;  %v475_v3 = vadd.f32 %v857_v60, %v378_v0 }
 0x186   : > { %v460_v1 = vadd.f32 %v459_v62, %v363_v56  ;;  %v470_v2 = vadd.f32 %v469_v63, %v373_v58 }
 0x187   : > { %932 = vtanh.f32 %v465_v61 }
 0x188   : > { %934 = vtanh.f32 %v460_v1 }
 0x189   : > { %936 = vtanh.f32 %v470_v2 }
 0x18a   : > { %938 = vtanh.f32 %v475_v3 }
 0x191   : > { %v933_v5 = vpop.eup %932 }
 0x192   : > { %v507_v7 = vmul.f32 %v933_v5, %v494_v6  ;;  %v935_v8 = vpop.eup %934 }
 0x193   : > { %v937_v9 = vpop.eup %936  ;;  %v506_v10 = vmul.f32 %v935_v8, %v489_v4 }
 0x194   : > { %v939_v11 = vpop.eup %938  ;;  %v508_v14 = vmul.f32 %v937_v9, %v499_v12 }
 0x195   : > { %v510_v13 = vadd.f32 %v507_v7, %v506_v10  ;;  %v509_v16 = vmul.f32 %v939_v11, %v504_v15 }
 0x197   : > { %v511_v17 = vadd.f32 %v510_v13, %v508_v14 }
 0x199   : > { %v512_v18 = vadd.f32 %v511_v17, %v509_v16 }
 0x19b   : > { %v513_v20 = vrot.slane %v512_v18, 4 }
 0x19d   : > { %v514_v21 = vadd.f32 %v513_v20, %v512_v18 }
 0x19f   : > { %v515_v22 = vrot.slane %v514_v21, 2 }
 0x1a1   : > { %v516_v23 = vadd.f32 %v515_v22, %v514_v21 }
 0x1a3   : > { %v517_v24 = vrot.slane %v516_v23, 1 }
 0x1a5   : > { %v518_v26 = vadd.f32 %v517_v24, %v516_v23 }
 0x1a7   : > { %v1187_v27 = vadd.f32 %v520_v25, %v518_v26 }
 0x1a9   : > { %v525_v28 = vand.u32 2139095040, %v1187_v27  ;;  %v522_v32 = vand.u32 2147483647, %v1187_v27  ;;  %vm524_vm10 = vcmp.lt.s32.totalorder %v1187_v27, 0  ;;  %vm614_vm2 = vweird.f32 %v1187_v27 }
 0x1ab   : > { %v526_v29 = vshrl.u32 %v525_v28, 23  ;;  %v529_v35 = vand.u32 8388607, %v522_v32  ;;  %vm523_vm11 = vcmp.le.f32.partialorder %v522_v32, 0.7853982 }
 0x1ad   : > { %v824_v30 = vadd.s32 4294967169, %v526_v29  ;;  %v530_v54 = vor.u32 8388608, %v529_v35 }
 0x1af   : > { %v532_v31 = vadd.s32 1, %v824_v30  ;;  %v570_v4 = vshll.u32 %v530_v54, 8 }
 0x1b1   : > { %vm533_vm3 = vcmp.gt.s32.totalorder %v532_v31, 0 }
 0x1b2   : > { %v534_v33 = vsel %vm533_vm3, %v532_v31, 0 }
 0x1b3   : > { %v536_v34 = vand.u32 31, %v534_v33  ;;  %v535_v37 = vshrl.u32 %v534_v33, 5 }
 0x1b5   : > { %v537_v36 = vsub.s32 32, %v536_v34  ;;  %v539_v39 = vshll.u32 %v1009_v38, %v536_v34  ;;  %v542_v41 = vshll.u32 %v1010_v40, %v536_v34  ;;  %v545_v45 = vshll.u32 %v1011_v43, %v536_v34 }
 0x1b6   : > { %v548_v48 = vshll.u32 %v1012_v46, %v536_v34  ;;  %v551_v51 = vshll.u32 %v1013_v49, %v536_v34  ;;  %vm554_vm4 = vcmp.lt.s32.totalorder %v535_v37, 1  ;;  %vm557_vm5 = vcmp.lt.s32.totalorder %v535_v37, 4 }
 0x1b7   : > { %v540_v42 = vshrl.u32 %v1010_v40, %v537_v36  ;;  %v543_v44 = vshrl.u32 %v1011_v43, %v537_v36  ;;  %v546_v47 = vshrl.u32 %v1012_v46, %v537_v36  ;;  %v549_v50 = vshrl.u32 %v1013_v49, %v537_v36 }
 0x1b8   : > { %v552_v53 = vshrl.u32 %v1014_v52, %v537_v36  ;;  %v538_v63 = vshrl.u32 %v1009_v38, %v537_v36  ;;  %vm556_vm6 = vcmp.lt.s32.totalorder %v535_v37, 3  ;;  %vm555_vm7 = vcmp.lt.s32.totalorder %v535_v37, 2 }
 0x1b9   : > { %v541_v55 = vor.u32 %v540_v42, %v539_v39  ;;  %v544_v56 = vor.u32 %v543_v44, %v542_v41  ;;  %v547_v57 = vor.u32 %v546_v47, %v545_v45  ;;  %v550_v58 = vor.u32 %v549_v50, %v548_v48 }
 0x1ba   : > { %v553_v59 = vor.u32 %v552_v53, %v551_v51 }
 0x1bb   : > { %v559_v60 = vsel %vm557_vm5, %v547_v57, 2102212464  ;;  %v562_v61 = vsel %vm554_vm4, %v541_v55, %v544_v56  ;;  %v566_v62 = vsel %vm554_vm4, %v544_v56, %v547_v57  ;;  %v563_v0 = vsel %vm557_vm5, %v550_v58, 920167782 }
 0x1bc   : > { %v567_v1 = vsel %vm557_vm5, %v553_v59, 1326507024  ;;  %v564_v2 = vsel %vm556_vm6, %v547_v57, %v563_v0  ;;  %v558_v5 = vsel %vm554_vm4, %v538_v63, %v541_v55  ;;  %v560_v6 = vsel %vm556_vm6, %v544_v56, %v559_v60 }
 0x1bd   : > { %v568_v3 = vsel %vm556_vm6, %v550_v58, %v567_v1  ;;  %v565_v7 = vsel %vm555_vm7, %v562_v61, %v564_v2  ;;  %v561_v13 = vsel %vm555_vm7, %v558_v5, %v560_v6 }
 0x1be   : > { %v569_v8 = vsel %vm555_vm7, %v566_v62, %v568_v3  ;;  %v1196_v11 = vmul.u32.u64.low %v570_v4, %v565_v7  ;;  %v1197_v12 = vmul.u32.u64.high %v570_v4, %v565_v7, %v1196_v11  ;;  %v577_v15 = vmul.u32 %v570_v4, %v561_v13 }
 0x1bf   : > { %v1193_v9 = vmul.u32.u64.low %v570_v4, %v569_v8  ;;  %v1194_v10 = vmul.u32.u64.high %v570_v4, %v569_v8, %v1193_v9 }
 0x1c0   : > { %v580_v14 = vadd.s32 1, %v1197_v12 }
 0x1c1   : > { %vm579_vm8 = vc.u32 %v1194_v10, %v1196_v11  ;;  %v578_v29 = vadd.s32 %v1196_v11, %v1194_v10 }
 0x1c2   : > { %v581_v16 = vsel %vm579_vm8, %v580_v14, %v1197_v12 }
 0x1c3   : > { %v582_v17 = vadd.s32 %v581_v16, %v577_v15 }
 0x1c5   : > { %v583_v18 = vadd.s32 536870912, %v582_v17 }
 0x1c7   : > { %v584_v20 = vshrl.u32 %v583_v18, 30 }
 0x1c9   : > { %v585_v21 = vshll.u32 %v584_v20, 30  ;;  %v608_v42 = vsub.s32 4, %v584_v20 }
 0x1cb   : > { %v586_v22 = vsub.s32 %v582_v17, %v585_v21  ;;  %v609_v45 = vsel %vm524_vm10, %v608_v42, %v584_v20 }
 0x1cc   : > { %v611_v47 = vsel %vm523_vm11, 0, %v609_v45 }
 0x1cd   : > { %v588_v23 = vsub.s32 0, %v586_v22  ;;  %v718_v48 = vadd.s32 3, %v611_v47  ;;  %v615_v49 = vand.u32 3, %v611_v47 }
 0x1cf   : > { %v825_v24 = vmin.u32 %v588_v23, %v586_v22  ;;  %v719_v50 = vand.u32 3, %v718_v48  ;;  %vm620_vm12 = vcmp.eq.s32.totalorder %v615_v49, 2  ;;  %vm617_vm14 = vcmp.eq.s32.totalorder %v615_v49, 0 }
 0x1d0   : > { %vm616_vm0 = vcmp.lt.s32.totalorder %v615_v49, 2 }
 0x1d1   : > { %v590_v25 = vclz %v825_v24  ;;  %vm724_vm13 = vcmp.eq.s32.totalorder %v719_v50, 2  ;;  %vm721_vm15 = vcmp.eq.s32.totalorder %v719_v50, 0  ;;  %vm720_vm1 = vcmp.lt.s32.totalorder %v719_v50, 2 }
 0x1d3   : > { %v826_v26 = vadd.s32 4294967294, %v590_v25 }
 0x1d5   : > { %vm827_vm9 = vcmp.lt.s32.totalorder %v826_v26, 0 }
 0x1d6   : > { %v593_v28 = vsel %vm827_vm9, 0, %v826_v26 }
 0x1d7   : > { %v594_v30 = vsub.s32 32, %v593_v28  ;;  %v598_v31 = vsub.s32 4294967266, %v593_v28  ;;  %v595_v33 = vshll.u32 %v586_v22, %v593_v28 }
 0x1d9   : > { %v596_v34 = vshrl.u32 %v578_v29, %v594_v30  ;;  %v599_v35 = vadd.s32 127, %v598_v31 }
 0x1db   : > { %v597_v36 = vor.u32 %v596_v34, %v595_v33  ;;  %v600_v37 = vshll.u32 %v599_v35, 23 }
 0x1dd   : > { %v601_v38 = vor.u32 4788187, %v600_v37  ;;  %v604_v40 = vcvt.s32.f32 %v597_v36 }
 0x1df   : > { %v602_v39 = vand.u32 2147483647, %v601_v38 }
 0x1e1   : > { %v605_v41 = vmul.f32 %v604_v40, %v602_v39 }
 0x1e3   : > { %v606_v43 = vxor.u32 2147483648, %v605_v41 }
 0x1e5   : > { %v607_v44 = vsel %vm524_vm10, %v606_v43, %v605_v41 }
 0x1e6   : > { %v610_v46 = vsel %vm523_vm11, %v1187_v27, %v607_v44 }
 0x1e7   : > { %940 = vcosq.f32 %v610_v46 }
 0x1e8   : > { %942 = vsinq.f32 %v610_v46 }
 0x1f1   : > { %v941_v51 = vpop.eup %940 }
 0x1f2   : > { %v943_v52 = vpop.eup %942  ;;  %v621_v53 = vxor.u32 2147483648, %v941_v51 }
 0x1f3   : > { %v618_v54 = vxor.u32 2147483648, %v943_v52 }
 0x1f4   : > { %v622_v32 = vsel %vm620_vm12, %v621_v53, %v943_v52  ;;  %v726_v55 = vsel %vm724_vm13, %v621_v53, %v943_v52 }
 0x1f5   : > { %v619_v56 = vsel %vm617_vm14, %v941_v51, %v618_v54  ;;  %v723_v57 = vsel %vm721_vm15, %v941_v51, %v618_v54 }
 0x1f6   : > { %v623_v58 = vsel %vm616_vm0, %v619_v56, %v622_v32  ;;  %v727_v59 = vsel %vm720_vm1, %v723_v57, %v726_v55 }
 0x1f7   : > { %v624_v60 = vsel %vm614_vm2, nan, %v623_v58  ;;  %v728_v61 = vsel %vm614_vm2, nan, %v727_v59 }
 0x1f8   : > { %v730_v62 = vmul.f32 %v728_v61, %v1168_v19  ;;  %v729_v63 = vmul.f32 %v624_v60, %v1168_v19 }
 0x1fa   : > { %v732_v0 = vrot.slane %v730_v62, 1  ;;  %v735_v1 = vrot.slane %v730_v62, 7 }
 0x1fc   : > { %v734_v2 = vadd.f32 %v732_v0, %v729_v63  ;;  %v737_v3 = vsub.f32 %v729_v63, %v735_v1 }
 0x1fe   : > { %738 = vst [vmem:[%s1183_s16] sm:$0x1] %v734_v2  ;;  %739 = vst [vmem:[%s1183_s16] sm:$0x2] %v737_v3 }
 0x1ff   : > { %957 = shalt.err (!%p954_p3)
}
 0x200   : > { %s958_s9 = scalar_lea.hbm %s1215_s22, 64  ;;  %s962_s15 = scalar_lea.hbm %s1268_s7, 128 }
 0x201   : > { %p959_p4 = scmp.ne.s32.totalorder %s1215_s22, %s958_s9  ;;  %p963_p9 = scmp.lt.u32.totalorder %s1215_s22, %s1268_s7 }
 0x202   : > { %p964_p10 = scmp.lt.u32.totalorder %s962_s15, %s958_s9  ;;  %p966_p12 = scmp.lt.u32.totalorder %s958_s9, %s1215_s22 }
 0x203   : > { %p960_p7 = pnand %p959_p4, %p1097_p5 }
 0x204   : > { %p965_p11 = por %p964_p10, %p963_p9 }
 0x205   : > { %p961_p8 = pneg %p960_p7 }
 0x206   : > { %p967_p13 = por %p966_p12, %p965_p11 }
 0x208   : > { %p968_p0 = pnand %p967_p13, %p961_p8 }
 0x20a   : > { %971 = shalt.err (!%p968_p0)
}
 0x20b   : > { %874 = dma.vmem_to_hbm [thread:$0]  (%p1097_p5), %s1217_s19, 64, %s1215_s22, %s742_s6  }
 0x20c PF: > { %p880_p1 = scmp.ge.s32.totalorder %s1006_s29, 2  ;;  %s767_s18 = sand.u32 1, %s994_s26  }
 0x20d   : > { %s768_s20 = scalar_lea.sflag [#allocation4], %s767_s18 }
 0x20e   : > { %p877_p2 = pnand %p880_p1, %p1101_p6 }
 0x210   : > { %989 = dma.done.wait (!%p877_p2), %s768_s20, 64  }
 0x211   : > { %991 = vsyncadd (!%p877_p2), %s768_s20, 4294967232  ;;  %p18_p3 = scmp.ge.s32.totalorder %s1084_s8, 4   ;;  %s1271_s26 = smov %s998_s27 }
 0x212   : > { %s1272_s27 = smov %s1002_s28  ;;  %s1273_s28 = smov %s1095_s11 }
 0x213   : > { %s1274_s29 = smov %s1084_s8  ;;  %20 = sbr.rel (!%p18_p3) target bundleno = 5 (0x5), region = 83 }
 0x21a   :  { %773 = vsyncpa [#allocation4], 1 }
 0x21b   :  { %775 = vsyncpa [#allocation4 + $0x1], 1 }

</bundles_post_ra>
